<compile_context>
chip_gen: v7x
topology: tpu7x:2x2x1
jax: 0.10.0
libtpu: 0.0.40
codegen_flags: <defaults>
</compile_context>

<pallas_src>
import jax
import jax.numpy as jnp
from jax.experimental import pallas as pl
from jax.experimental.pallas import tpu as pltpu

EPS = 1e-5  # nn.LayerNorm default


def _round_up(n, m):
    return ((n + m - 1) // m) * m


def _vmem_budget_bytes():
    """Generation-aware cap for the kernel's VMEM working set."""
    try:
        cap = pltpu.get_tpu_info().vmem_capacity_bytes
    except Exception:
        cap = 64 << 20  # conservative fallback: v7x physical VMEM
    # Leave ~3/8 of physical VMEM for compiler scratch / other live buffers:
    # 128 MiB parts (v5e/v6e) -> 80 MiB, 64 MiB parts (v7x) -> 40 MiB.
    return (cap * 5) // 8


def _prenorm_kernel(x_ref, gb_ref, w_ref, b_ref, o_ref, normed_ref):
    # Grid: (row-tile i ["parallel"], H-tile j ["arbitrary", innermost]).
    # x_ref:      (BM, D)   rows to normalize (same block for all j)
    # gb_ref:     (2, D)    stacked LayerNorm weight (row 0) / bias (row 1)
    # w_ref:      (D, BN)   Linear weight tile, (in, out) layout
    # b_ref:      (1, BN)   Linear bias tile
    # o_ref:      (BM, BN)
    # normed_ref: (BM, D)   VMEM scratch caching the normalized rows
    #
    # NOTE: the normed_ref cache requires j to run sequentially after j == 0
    # for a given i on the same core -- do not mark the j axis "parallel".
    j = pl.program_id(1)

    @pl.when(j == 0)
    def _():
        x = x_ref[...].astype(jnp.float32)
        gb = gb_ref[...].astype(jnp.float32)
        # LayerNorm over last axis (biased variance, matches torch.nn.LayerNorm)
        mean = jnp.mean(x, axis=-1, keepdims=True)
        xc = x - mean
        var = jnp.mean(xc * xc, axis=-1, keepdims=True)
        inv = jax.lax.rsqrt(var + EPS)
        normed = xc * inv * gb[0:1, :] + gb[1:2, :]
        # Cast once to the matmul operand dtype (bf16 weights -> bf16
        # activations; accumulation stays f32 below).
        normed_ref[...] = normed.astype(normed_ref.dtype)

    y = jnp.dot(normed_ref[...], w_ref[...], preferred_element_type=jnp.float32)
    y = y + b_ref[...].astype(jnp.float32)
    o_ref[...] = y.astype(o_ref.dtype)


def prepare_params(gamma, beta, w, b, *, compute_dtype=None):
    """One-time parameter prep (param-load time, NOT per forward call).

    gamma, beta: (D,) LayerNorm params -> stacked into one (2, D) array.
    w: (H, D) torch Linear weight     -> transposed once to (D, H).
    b: (H,)                           -> reshaped to (1, H).
    compute_dtype: optionally cast the weight (e.g. jnp.bfloat16 for v6e/v7x
    bf16-native MXUs; note this changes numerics slightly vs. pure f32).
    """
    gb = jnp.stack([jnp.asarray(gamma), jnp.asarray(beta)], axis=0)
    w_t = jnp.asarray(w).T
    if compute_dtype is not None:
        w_t = w_t.astype(compute_dtype)
    b2 = jnp.asarray(b).reshape(1, -1)
    return gb, w_t, b2


def prenorm_linear(x, gb, w_t, b2, *, block_rows=None, block_cols=256):
    """PreNorm(dim, Linear(dim, hidden)) forward.

    x: (..., D); gb: (2, D); w_t: (D, H); b2: (1, H)  (from prepare_params)
    returns (..., H)
    """
    *lead, D = x.shape
    H = w_t.shape[1]
    M = 1
    for d in lead:
        M *= d
    x2 = x.reshape(M, D)

    isz = lambda dt: jnp.dtype(dt).itemsize
    row_align = 16 if x.dtype == jnp.bfloat16 else 8

    # Lane-dense output tiles: full H when it fits, else a multiple of 128
    # (the last partial column tile is store-masked by Pallas).
    bn = H if H <= block_cols else block_cols

    if block_rows is None:
        block_rows = 1024 if x.dtype == jnp.bfloat16 else 512
    bm = min(block_rows, _round_up(M, row_align))

    budget = _vmem_budget_bytes()
    headroom = 4 << 20

    def resident_bytes(bm_, bn_):
        # Double-buffered pipeline tiles + single LN scratch.
        return (
            2
            * (
                bm_ * D * isz(x2.dtype)       # x row tile
                + D * bn_ * isz(w_t.dtype)    # weight column tile
                + bm_ * bn_ * isz(x.dtype)    # output tile
                + 2 * D * isz(gb.dtype)       # gamma/beta
                + bn_ * isz(b2.dtype)         # bias tile
            )
            + bm_ * D * isz(w_t.dtype)        # cached LN output (single)
        )

    # D-aware clamp: shrink bm first, then bn, until the working set fits.
    while bm > row_align and resident_bytes(bm, bn) + headroom > budget:
        bm = max(row_align, _round_up(bm // 2, row_align))
    while bn > 128 and resident_bytes(bm, bn) + headroom > budget:
        bn = max(128, _round_up(bn // 2, 128))

    # At least two row tiles whenever M allows, so the "parallel" axis has
    # work to shard across both TensorCores on v7x (no-op on 1-TC v5e/v6e).
    if pl.cdiv(M, bm) < 2 and M > row_align:
        bm = _round_up(pl.cdiv(M, 2), row_align)

    grid = (pl.cdiv(M, bm), pl.cdiv(H, bn))

    vmem_limit = int(min(max(resident_bytes(bm, bn) + headroom, 16 << 20), budget))

    cost = pl.CostEstimate(
        flops=2 * M * D * H + 8 * M * D,
        transcendentals=0,
        bytes_accessed=(
            M * D * isz(x2.dtype)
            + grid[0] * D * H * isz(w_t.dtype)   # weight re-streamed per row tile
            + M * H * isz(x.dtype)
            + 2 * D * isz(gb.dtype)
            + H * isz(b2.dtype)
        ),
    )

    out = pl.pallas_call(
        _prenorm_kernel,
        out_shape=jax.ShapeDtypeStruct((M, H), x.dtype),
        grid_spec=pltpu.PrefetchScalarGridSpec(
            num_scalar_prefetch=0,
            grid=grid,
            in_specs=[
                pl.BlockSpec((bm, D), lambda i, j: (i, 0)),   # x rows (j-invariant)
                pl.BlockSpec((2, D), lambda i, j: (0, 0)),    # gamma/beta (invariant)
                pl.BlockSpec((D, bn), lambda i, j: (0, j)),   # weight column tile
                pl.BlockSpec((1, bn), lambda i, j: (0, j)),   # bias column tile
            ],
            out_specs=pl.BlockSpec((bm, bn), lambda i, j: (i, j)),
            scratch_shapes=[pltpu.VMEM((bm, D), w_t.dtype)],  # cached LN output
        ),
        compiler_params=pltpu.CompilerParams(
            # j ("arbitrary") must stay the sequential inner axis: the LN
            # scratch written at j==0 is consumed by j>0 on the same core.
            dimension_semantics=("parallel", "arbitrary"),
            vmem_limit_bytes=vmem_limit,
        ),
        cost_estimate=cost,
    )(x2, gb, w_t, b2)

    return out.reshape(*lead, H)


def prenorm_reference(x, gamma, beta, w, b):
    mean = jnp.mean(x, axis=-1, keepdims=True)
    var = jnp.mean((x - mean) ** 2, axis=-1, keepdims=True)
    normed = (x - mean) * jax.lax.rsqrt(var + EPS) * gamma + beta
    return normed @ w.T + b


if __name__ == "__main__":
    key = jax.random.PRNGKey(0)
    B, S, D, H = 2, 8, 32, 32

    k_x, k_g, k_b, k_w, k_bi = jax.random.split(key, 5)
    x = jax.random.normal(k_x, (B, S, D), dtype=jnp.float32)

    # Deterministic parameter init (nn.LayerNorm: ~ones/zeros; Linear: random)
    gamma = jnp.ones((D,), jnp.float32) + 0.01 * jax.random.normal(k_g, (D,))
    beta = 0.01 * jax.random.normal(k_b, (D,))
    w = jax.random.normal(k_w, (H, D), dtype=jnp.float32) * (1.0 / jnp.sqrt(D))
    b = 0.01 * jax.random.normal(k_bi, (H,))

    # One-time parameter prep (transpose / stack / reshape happen here, not
    # inside the forward call).
    gb, w_t, b2 = prepare_params(gamma, beta, w, b)

    out = prenorm_linear(x, gb, w_t, b2)
    out = jax.block_until_ready(out)

    ref = prenorm_reference(x, gamma, beta, w, b)
    assert out.shape == (B, S, H)
    assert jnp.allclose(out, ref, atol=1e-4, rtol=1e-4), "mismatch vs reference"

    print("KERNEL_OK")
</pallas_src>

<mosaic_0001>
module attributes {stable_mosaic.version = 11 : i64} {
  func.func @_prenorm_kernel(%arg0: i32, %arg1: i32, %arg2: memref<8x32xf32, #tpu.memory_space<vmem>>, %arg3: memref<2x32xf32, #tpu.memory_space<vmem>>, %arg4: memref<32x32xf32, #tpu.memory_space<vmem>>, %arg5: memref<1x32xf32, #tpu.memory_space<vmem>>, %arg6: memref<8x32xf32, #tpu.memory_space<vmem>>, %arg7: memref<8x32xf32, #tpu.memory_space<vmem>>) attributes {dimension_semantics = [#tpu.dimension_semantics<parallel>, #tpu.dimension_semantics<arbitrary>], iteration_bounds = array<i64: 2, 1>, scalar_prefetch = 0 : i64, scratch_operands = 1 : i64, tpu.core_type = #tpu.core_type<tc>, window_params = [{transform_indices = @transform_0, window_bounds = array<i64: 8, 32>}, {pipeline_mode = #tpu.pipeline_mode<synchronous>, transform_indices = @transform_1, window_bounds = array<i64: 2, 32>}, {transform_indices = @transform_2, window_bounds = array<i64: 32, 32>}, {transform_indices = @transform_3, window_bounds = array<i64: 1, 32>}, {transform_indices = @transform_4, window_bounds = array<i64: 8, 32>}]} {
    %c0_i32 = arith.constant 0 : i32
    %0 = arith.cmpi eq, %arg1, %c0_i32 : i32
    %1 = arith.extui %0 : i1 to i32
    %c0_i32_0 = arith.constant 0 : i32
    %2 = arith.cmpi ne, %1, %c0_i32_0 : i32
    scf.if %2 {
      %c0_8 = arith.constant 0 : index
      %c0_9 = arith.constant 0 : index
      %10 = vector.load %arg2[%c0_8, %c0_9] : memref<8x32xf32, #tpu.memory_space<vmem>>, vector<8x32xf32>
      %c0_10 = arith.constant 0 : index
      %c0_11 = arith.constant 0 : index
      %11 = vector.load %arg3[%c0_10, %c0_11] : memref<2x32xf32, #tpu.memory_space<vmem>>, vector<2x32xf32>
      %cst_12 = arith.constant dense<0.000000e+00> : vector<8xf32>
      %12 = vector.multi_reduction <add>, %10, %cst_12 [1] : vector<8x32xf32> to vector<8xf32>
      %13 = vector.shape_cast %12 : vector<8xf32> to vector<8x1xf32>
      %cst_13 = arith.constant 3.200000e+01 : f32
      %14 = vector.broadcast %cst_13 : f32 to vector<8x1xf32>
      %15 = arith.divf %13, %14 : vector<8x1xf32>
      %16 = vector.broadcast %15 : vector<8x1xf32> to vector<8x32xf32>
      %17 = arith.subf %10, %16 : vector<8x32xf32>
      %18 = arith.mulf %17, %17 : vector<8x32xf32>
      %cst_14 = arith.constant dense<0.000000e+00> : vector<8xf32>
      %19 = vector.multi_reduction <add>, %18, %cst_14 [1] : vector<8x32xf32> to vector<8xf32>
      %20 = vector.shape_cast %19 : vector<8xf32> to vector<8x1xf32>
      %cst_15 = arith.constant 3.200000e+01 : f32
      %21 = vector.broadcast %cst_15 : f32 to vector<8x1xf32>
      %22 = arith.divf %20, %21 : vector<8x1xf32>
      %cst_16 = arith.constant 9.99999974E-6 : f32
      %23 = vector.broadcast %cst_16 : f32 to vector<8x1xf32>
      %24 = arith.addf %22, %23 : vector<8x1xf32>
      %25 = math.rsqrt %24 : vector<8x1xf32>
      %26 = vector.broadcast %25 : vector<8x1xf32> to vector<8x32xf32>
      %27 = arith.mulf %17, %26 : vector<8x32xf32>
      %28 = vector.extract_strided_slice %11 {offsets = [0, 0], sizes = [1, 32], strides = [1, 1]} : vector<2x32xf32> to vector<1x32xf32>
      %29 = vector.broadcast %28 : vector<1x32xf32> to vector<8x32xf32>
      %30 = arith.mulf %27, %29 : vector<8x32xf32>
      %31 = vector.extract_strided_slice %11 {offsets = [1, 0], sizes = [1, 32], strides = [1, 1]} : vector<2x32xf32> to vector<1x32xf32>
      %32 = vector.broadcast %31 : vector<1x32xf32> to vector<8x32xf32>
      %33 = arith.addf %30, %32 : vector<8x32xf32>
      %c0_17 = arith.constant 0 : index
      %c0_18 = arith.constant 0 : index
      %34 = vector.load %arg7[%c0_17, %c0_18] : memref<8x32xf32, #tpu.memory_space<vmem>>, vector<8x32xf32>
      tpu.vector_store %arg7[%c0_17, %c0_18], %33 {strides = array<i32>} : memref<8x32xf32, #tpu.memory_space<vmem>>, vector<8x32xf32>,
    } else {
    }
    %c0 = arith.constant 0 : index
    %c0_1 = arith.constant 0 : index
    %3 = vector.load %arg7[%c0, %c0_1] : memref<8x32xf32, #tpu.memory_space<vmem>>, vector<8x32xf32>
    %c0_2 = arith.constant 0 : index
    %c0_3 = arith.constant 0 : index
    %4 = vector.load %arg4[%c0_2, %c0_3] : memref<32x32xf32, #tpu.memory_space<vmem>>, vector<32x32xf32>
    %cst = arith.constant dense<0.000000e+00> : vector<8x32xf32>
    %5 = tpu.matmul %3, %4, %cst {dimension_numbers = #tpu.dot_dimension_numbers<[1], [0], [0], [1], [0, 0, 1, 1], [], []>} : vector<8x32xf32>, vector<32x32xf32>, vector<8x32xf32> -> vector<8x32xf32>
    %c0_4 = arith.constant 0 : index
    %c0_5 = arith.constant 0 : index
    %6 = vector.load %arg5[%c0_4, %c0_5] : memref<1x32xf32, #tpu.memory_space<vmem>>, vector<1x32xf32>
    %7 = vector.broadcast %6 : vector<1x32xf32> to vector<8x32xf32>
    %8 = arith.addf %5, %7 : vector<8x32xf32>
    %c0_6 = arith.constant 0 : index
    %c0_7 = arith.constant 0 : index
    %9 = vector.load %arg6[%c0_6, %c0_7] : memref<8x32xf32, #tpu.memory_space<vmem>>, vector<8x32xf32>
    tpu.vector_store %arg6[%c0_6, %c0_7], %8 {strides = array<i32>} : memref<8x32xf32, #tpu.memory_space<vmem>>, vector<8x32xf32>,
    return
  }
  func.func @transform_0(%arg0: i32, %arg1: i32) -> (i32, i32) {
    %c0_i32 = arith.constant 0 : i32
    %c0_i32_0 = arith.constant 0 : i32
    return %arg0, %c0_i32 : i32, i32
  }
  func.func @transform_1(%arg0: i32, %arg1: i32) -> (i32, i32) {
    %c0_i32 = arith.constant 0 : i32
    %c0_i32_0 = arith.constant 0 : i32
    %c0_i32_1 = arith.constant 0 : i32
    return %c0_i32, %c0_i32_0 : i32, i32
  }
  func.func @transform_2(%arg0: i32, %arg1: i32) -> (i32, i32) {
    %c0_i32 = arith.constant 0 : i32
    %c0_i32_0 = arith.constant 0 : i32
    return %c0_i32, %arg1 : i32, i32
  }
  func.func @transform_3(%arg0: i32, %arg1: i32) -> (i32, i32) {
    %c0_i32 = arith.constant 0 : i32
    %c0_i32_0 = arith.constant 0 : i32
    return %c0_i32, %arg1 : i32, i32
  }
  func.func @transform_4(%arg0: i32, %arg1: i32) -> (i32, i32) {
    %c0_i32 = arith.constant 0 : i32
    return %arg0, %arg1 : i32, i32
  }
}

</mosaic_0001>

<bundles_post_ra>
// kernel: tpu_custom_call.1
= control target key start
LH: loop header
LB: loop body
LE: loop exit
PB: predicated region body
PF: predicated region fallthrough
CT: control target
= control target key end

     0   :  { %9 = vsyncpa [#allocation4], 0  ;;  %s1028_s0 = inlined_call_operand.hbm [shape: f32[16,32], index: 0, kind: input, shape index: {}]   ;;  %s1029_s1 = inlined_call_operand.vmem [shape: f32[2,32], index: 1, kind: input, shape index: {}]   ;;  %s1030_s2 = inlined_call_operand.hbm [shape: f32[32,32], index: 2, kind: input, shape index: {}]   ;;  %s1031_s3 = inlined_call_operand.vmem [shape: f32[1,32], index: 3, kind: input, shape index: {}]   ;;  %s1032_s4 = inlined_call_operand.hbm [shape: f32[16,32], index: 4, kind: output, shape index: {}]  }
   0x1   :  { %11 = vsyncpa [#allocation4 + $0x1], 0 }
   0x2   :  { %12 = vsyncpa [#allocation7], 0 }
   0x3   :  { %13 = vsyncpa [#allocation5], 0 }
   0x4   :  { %15 = vsyncpa [#allocation5 + $0x1], 0  ;;  %s799_s15 = smov 0   ;;  %s801_s16 = smov 0  }
   0x5   :  { %s803_s17 = smov 0   ;;  %s805_s18 = smov 0  }
   0x6   :  { %s807_s19 = smov 0   ;;  %s809_s20 = smov 0  }
   0x7 LB: > { %s500_s21 = sadd.s32 4294967295, %s764_s20   ;;  %s501_s22 = sadd.s32 4294967294, %s764_s20   ;;  %s764_s20 = sphi %s809_s20, %s21_s20   ;;  %s760_s19 = sphi %s807_s19, %s1056_s19   ;;  %s756_s18 = sphi %s805_s18, %s1055_s18   ;;  %s752_s17 = sphi %s803_s17, %s1054_s17   ;;  %s748_s16 = sphi %s801_s16, %s1053_s16   ;;  %s744_s15 = sphi %s799_s15, %s1052_s15  }
   0x8   : > { %p53_p0 = scmp.ne.s32.totalorder %s748_s16, %s744_s15  ;;  %p833_p1 = scmp.eq.s32.totalorder %s500_s21, 0 }
   0x9   : > { %p837_p2 = scmp.eq.s32.totalorder %s500_s21, 1  ;;  %p158_p3 = scmp.eq.s32.totalorder %s501_s22, 1 }
   0xa   : > { %s1037_s23 = scalar_select %p833_p1, 1, 0 }
   0xb   : > { %s1038_s24 = scalar_select %p837_p2, 1, 0 }
   0xc   : > { %p843_p4 = por %p833_p1, %p53_p0  ;;  %p502_p5 = scmp.ge.s32.totalorder %s764_s20, 1 }
   0xd   : > { %p848_p6 = por %p158_p3, %p53_p0  ;;  %p165_p7 = scmp.lt.s32.totalorder %s764_s20, 3 }
   0xe   : > { %s1039_s25 = scalar_select %p843_p4, 1, 0 }
   0xf   : > { %s1040_s26 = scalar_select %p848_p6, 1, 0 }
  0x10   : > { %p853_p8 = pnand %p502_p5, %p165_p7  ;;  %s766_s28 = smov [#allocation6]  }
  0x11   : > { %s182_s29 = sshll.u32 %s766_s28, 4  ;;  %s33_s5 = sadd.s32 1, %s760_s19  ;;  %s183_s29 = int_to_ptr.vmem [resolvable:$true] %s182_s29 }
  0x12   : > { %s1041_s27 = scalar_select %p853_p8, 1, 0 }
  0x13   : > { %p548_p9 = pneg %p853_p8  ;;  %s620_s8 = scalar_lea.hbm %s1030_s2, 512 }
  0x14   : > { %p621_p12 = scmp.ne.s32.totalorder %s1030_s2, %s620_s8  ;;  %p627_p5 = scmp.lt.u32.totalorder %s620_s8, %s1030_s2 }
  0x15   : > { %p862_p11 = pnand %p548_p9, %p833_p1 }
  0x17   : > { %p622_p13 = pneg %p862_p11 }
  0x19   : > { %p623_p0 = pnand %p622_p13, %p621_p12 }
  0x1b   : > { %p624_p3 = pneg %p623_p0 }
  0x1d   : > { %p629_p7 = pnand %p627_p5, %p624_p3 }
  0x1f   : > { %632 = shalt.err (!%p629_p7)
}
  0x20   : > { %s633_s13 = scalar_lea.vmem %s183_s29, 512  ;;  %p641_p1 = scmp.lt.s32.totalorder %s183_s29, %s183_s29 }
  0x21   : > { %p634_p9 = scmp.ne.s32.totalorder %s183_s29, %s633_s13  ;;  %p642_p4 = scmp.lt.s32.totalorder %s633_s13, %s633_s13 }
  0x23   : > { %p636_p10 = pnand %p634_p9, %p622_p13  ;;  %p643_p8 = por %p642_p4, %p641_p1 }
  0x25   : > { %p637_p6 = pneg %p636_p10 }
  0x27   : > { %p644_p2 = pnand %p643_p8, %p637_p6 }
  0x29   : > { %647 = shalt.err (!%p644_p2)
}
  0x2a   : > { %s767_s14 = smov 128   ;;  %s768_s21 = smov 8  }
  0x2b   : > { %551 = dma.hbm_to_vmem [thread:$0]  (!%p862_p11), %s1030_s2, 512, %s183_s29, [#allocation7], %s767_s14, %s767_s14, %s768_s21  }
  0x2c   : > { %p35_p1 = scmp.ge.s32.totalorder %s33_s5, 2  ;;  %s40_s6 = sadd.s32 1, %s752_s17 }
  0x2d   : > { %p47_p2 = scmp.ne.s32.totalorder %s752_s17, %s748_s16  ;;  %p48_p4 = scmp.eq.s32.totalorder %s764_s20, 0 }
  0x2e   : > { %s1058_s5 = smov (%p35_p1, %s33_s5), 0  ;;  %p1044_p8 = scmp.ne.s32.totalorder %s1038_s24, 0 }
  0x2f   : > { %p889_p6 = por %p48_p4, %p47_p2  ;;  %s37_s30 = ssub.s32 %s760_s19, %s1058_s5 }
  0x30   : > { %p895_p10 = por %p1044_p8, %p47_p2  ;;  %p561_p12 = scmp.lt.s32.totalorder %s764_s20, 2 }
  0x31   : > { %p38_p11 = scmp.eq.s32.totalorder %s37_s30, 0  ;;  %s202_s29 = sand.u32 1, %s752_s17  }
  0x32   : > { %s506_s9 = sshll.u32 %s202_s29, 3  ;;  %s507_s11 = sshll.u32 %s760_s19, 7 }
  0x33   : > { %s904_s10 = scalar_select %p38_p11, %s752_s17, %s40_s6  }
  0x34   : > { %s910_s14 = scalar_lea.hbm %s1028_s0, %s507_s11  ;;  %s206_s24 = scalar_lea.vmem [#allocation3], %s506_s9 }
  0x35   : > { %s213_s21 = sshll.u32 %s206_s24, 4  ;;  %p916_p13 = pnand %p561_p12, %p889_p6  ;;  %s912_s21 = int_to_ptr.vmem [resolvable:$true] %s213_s21 }
  0x36   : > { %s203_s28 = scalar_lea.sflag [#allocation4], %s202_s29  ;;  %s648_s6 = scalar_lea.hbm %s910_s14, 128 }
  0x37   : > { %p649_p0 = scmp.ne.s32.totalorder %s910_s14, %s648_s6  ;;  %p650_p3 = pneg %p916_p13 }
  0x38   : > { %s653_s11 = scalar_lea.hbm %s1028_s0, 256  ;;  %p654_p9 = scmp.lt.u32.totalorder %s910_s14, %s1028_s0 }
  0x39   : > { %p651_p5 = pnand %p650_p3, %p649_p0  ;;  %p655_p1 = scmp.lt.u32.totalorder %s653_s11, %s648_s6 }
  0x3a   : > { %p657_p4 = scmp.lt.u32.totalorder %s648_s6, %s910_s14 }
  0x3b   : > { %p652_p7 = pneg %p651_p5  ;;  %p656_p2 = por %p655_p1, %p654_p9 }
  0x3d   : > { %p658_p6 = por %p657_p4, %p656_p2 }
  0x3f   : > { %p659_p8 = pnand %p658_p6, %p652_p7 }
  0x41   : > { %662 = shalt.err (!%p659_p8)
}
  0x42   : > { %s663_s29 = scalar_lea.vmem %s912_s21, 128  ;;  %s769_s13 = smov [#allocation3]  }
  0x43   : > { %p664_p12 = scmp.ne.s32.totalorder %s912_s21, %s663_s29  ;;  %s668_s24 = sshll.u32 %s769_s13, 4  ;;  %s669_s24 = int_to_ptr.vmem [resolvable:$false] %s668_s24 }
  0x44   : > { %s670_s30 = scalar_lea.vmem %s669_s24, 256  ;;  %p671_p5 = scmp.lt.s32.totalorder %s912_s21, %s669_s24 }
  0x45   : > { %p666_p11 = pnand %p664_p12, %p650_p3  ;;  %p672_p9 = scmp.lt.s32.totalorder %s670_s30, %s663_s29 }
  0x47   : > { %p667_p0 = pneg %p666_p11  ;;  %p673_p1 = por %p672_p9, %p671_p5 }
  0x49   : > { %p674_p2 = pnand %p673_p1, %p667_p0 }
  0x4b   : > { %677 = shalt.err (!%p674_p2)
}
  0x4c   : > { %555 = dma.hbm_to_vmem [thread:$0]  (!%p916_p13), %s910_s14, 128, %s912_s21, %s203_s28  }
  0x4d   : > { %p1047_p7 = scmp.ne.s32.totalorder %s1041_s27, 0 }
  0x4e   : > { %s948_s6 = sand.u32 (!%p1047_p7), 1, %s748_s16   ;;  %p1048_p3 = scmp.ne.s32.totalorder (!%p1047_p7), %s1039_s25, 0 }
  0x4f   : > { %222 = sbr.rel (%p1047_p7) target bundleno = 640 (0x280), region = 36  ;;  %s509_s9 = sshll.u32 (!%p1047_p7), %s948_s6, 3 }
  0x50   : > { %s225_s11 = scalar_lea.sflag (!%p1047_p7), [#allocation4], %s948_s6  ;;  %s228_s7 = scalar_lea.vmem (!%p1047_p7), [#allocation3], %s509_s9 }
  0x56   : > { %731 = dma.done.wait (%p1048_p3), %s225_s11, 128  }
  0x57   : > { %733 = vsyncadd (%p1048_p3), %s225_s11, 4294967168  ;;  %p1049_p13 = scmp.ne.s32.totalorder %s1037_s23, 0 }
  0x59   : > { %735 = dma.done.wait (%p1049_p13), [#allocation7], 512  }
  0x5a   : > { %737 = vsyncadd (%p1049_p13), [#allocation7], 4294966784  ;;  %vm269_vm0 = vcmask 261120   ;;  %v267_v0 = vld [vmem:[%s228_s7] sm:$0xff]  ;;  %v296_v7 = vld [vmem:[#allocation6] sm:$0xff]  ;;  %v770_v10 = vmov 0.0|0.0   ;;  %v284_v17 = vlaneseq }
  0x5b   : > { %v270_v1 = vsel %vm269_vm0, %v267_v0, 0.0  ;;  %v297_v8 = vld [vmem:[#allocation6 + $0x8] sm:$0xff]  ;;  %534 = vmatprep.subr.bf16.mxu0 %v770_v10  ;;  %v298_v11 = vld [vmem:[#allocation6 + $0x10] sm:$0xff]  ;;  %v299_v12 = vld [vmem:[#allocation6 + $0x18] sm:$0xff]  ;;  %vm771_vm1 = vmmov 0   ;;  %v772_v14 = vmov 0.0  }
  0x5c   : > { %271 = vadd.xlane.f32.xlu0 %v270_v1  ;;  %v535_v9 = vpack.c.bf16 %v297_v8, %v296_v7  ;;  %v538_v13 = vpack.c.bf16 %v299_v12, %v298_v11  ;;  %531 = vmatprep.mubr.msk.f32.mxu0 %vm771_vm1, %v772_v14  ;;  %v285_v19 = vshrl.u32 %v284_v17, 7  ;;  %v268_v21 = vld [vmem:[%s1029_s1] sm:$0x3]  ;;  %s515_s21 = sshll.u32 %s756_s18, 7  ;;  %s259_s22 = scalar_lea.vmem [#allocation8], %s509_s9 }
  0x5d   : > { %v512_v30 = vld [vmem:[%s1031_s3] ss:$0 sm:$0xff]  ;;  %s397_s28 = sshll.u32 %s259_s22, 4  ;;  %s978_s13 = scalar_lea.hbm %s1032_s4, %s515_s21  ;;  %s980_s28 = int_to_ptr.vmem [resolvable:$true] %s397_s28 }
  0x5e   : > { %536 = vmatpush3.bf16.msra.mxu0 %v535_v9  ;;  %v286_v20 = vsub.s32 0, %v285_v19  ;;  %v291_v22 = vsub.s32 1, %v285_v19  ;;  %s383_s24 = scalar_lea.sflag [#allocation5], %s948_s6  ;;  %s678_s18 = scalar_lea.vmem %s980_s28, 128 }
  0x5f   : > { %537 = vmatprep.subr.bf16.mxu0 %v770_v10  ;;  %p679_p4 = scmp.ne.s32.totalorder %s980_s28, %s678_s18  ;;  %s773_s30 = smov [#allocation8]  }
  0x60   : > { %v287_v23 = vrot.slane %v268_v21, %v286_v20  ;;  %v292_v25 = vrot.slane %v268_v21, %v291_v22  ;;  %s682_s9 = sshll.u32 %s773_s30, 4  ;;  %s683_s9 = int_to_ptr.vmem [resolvable:$false] %s682_s9 }
  0x61   : > { %p680_p6 = pnand %p679_p4, %p895_p10  ;;  %s684_s11 = scalar_lea.vmem %s683_s9, 256 }
  0x62   : > { %539 = vmatpush3.bf16.msra.mxu0 %v538_v13  ;;  %p685_p12 = scmp.lt.s32.totalorder %s980_s28, %s683_s9  ;;  %p686_p11 = scmp.lt.s32.totalorder %s684_s11, %s678_s18 }
  0x63   : > { %p681_p8 = pneg %p680_p6 }
  0x64   : > { %p687_p0 = por %p686_p11, %p685_p12 }
  0x66   : > { %p688_p5 = pnand %p687_p0, %p681_p8 }
  0xe9   : > { %v272_v2 = vpop.xlane.xlu0 %271 }
  0xea   : > { %v274_v3 = vmul.f32 0.03125, %v272_v2 }
  0xec   : > { %v275_v4 = vsub.f32 %v267_v0, %v274_v3 }
  0xee   : > { %v276_v5 = vmul.f32 %v275_v4, %v275_v4 }
  0xf0   : > { %v277_v6 = vsel %vm269_vm0, %v276_v5, 0.0 }
  0xf1   : > { %278 = vadd.xlane.f32.xlu0 %v277_v6 }
 0x17e   : > { %v279_v15 = vpop.xlane.xlu0 %278 }
 0x17f   : > { %v280_v16 = vmul.f32 0.03125, %v279_v15 }
 0x181   : > { %v281_v18 = vadd.f32 1e-05, %v280_v16 }
 0x183   : > { %618 = vrsqrt.f32 %v281_v18 }
 0x18d   : > { %v619_v24 = vpop.eup %618 }
 0x18e   : > { %v283_v26 = vmul.f32 %v619_v24, %v275_v4 }
 0x190   : > { %v288_v27 = vmul.f32 %v287_v23, %v283_v26 }
 0x192   : > { %v293_v28 = vadd.f32 %v292_v25, %v288_v27 }
 0x194   : > { %294 = vst.msk [vmem:[#allocation2] sm:$0xff] %vm269_vm0, %v293_v28 }
 0x19b   : > { %v295_v29 = vld [vmem:[#allocation2] sm:$0xff] }
 0x19c   : > { %532 = vmatmul.mubr.msk.f32.vlgmr.msra.gmra.mrb[0].mxu0 %vm269_vm0, %v295_v29 }
 0x26f   : > { %v377_v31 = vpop.f32.mrb[0].mxu0 }
 0x270   : > { %v378_v32 = vadd.f32 %v512_v30, %v377_v31  ;;  %v533_v33 = vpop.f32.mrb[1].mxu0 }
 0x272   : > { %381 = vst.msk [vmem:[%s259_s22] sm:$0xff] %vm269_vm0, %v378_v32 }
 0x273   : > { %691 = shalt.err (!%p688_p5)
}
 0x274   : > { %s692_s6 = scalar_lea.hbm %s978_s13, 128  ;;  %s696_s25 = scalar_lea.hbm %s1032_s4, 256 }
 0x275   : > { %p693_p9 = scmp.ne.s32.totalorder %s978_s13, %s692_s6  ;;  %p697_p7 = scmp.lt.u32.totalorder %s978_s13, %s1032_s4 }
 0x276   : > { %p698_p3 = scmp.lt.u32.totalorder %s696_s25, %s692_s6  ;;  %p700_p4 = scmp.lt.u32.totalorder %s692_s6, %s978_s13 }
 0x277   : > { %p694_p1 = pnand %p693_p9, %p895_p10 }
 0x278   : > { %p699_p13 = por %p698_p3, %p697_p7 }
 0x279   : > { %p695_p2 = pneg %p694_p1 }
 0x27a   : > { %p701_p6 = por %p700_p4, %p699_p13 }
 0x27c   : > { %p702_p8 = pnand %p701_p6, %p695_p2 }
 0x27e   : > { %705 = shalt.err (!%p702_p8)
}
 0x27f   : > { %546 = dma.vmem_to_hbm [thread:$0]  (%p895_p10), %s980_s28, 128, %s978_s13, %s383_s24  }
 0x280 PF: > { %s409_s21 = sand.u32 1, %s744_s15   ;;  %p1050_p12 = scmp.ne.s32.totalorder %s1040_s26, 0 }
 0x281   : > { %p1051_p11 = scmp.ge.s32.totalorder %s764_s20, 2  ;;  %s410_s22 = scalar_lea.sflag [#allocation5], %s409_s21 }
 0x283   : > { %p557_p0 = pnand %p1051_p11, %p1050_p12 }
 0x285   : > { %739 = dma.done.wait (!%p557_p0), %s410_s22, 128  }
 0x286   : > { %741 = vsyncadd (!%p557_p0), %s410_s22, 4294967168  ;;  %s21_s20 = sadd.s32 1, %s764_s20   ;;  %s1052_s15 = smov %s748_s16 }
 0x287   : > { %p18_p5 = scmp.ge.s32.totalorder %s21_s20, 4   ;;  %s1053_s16 = smov %s752_s17 }
 0x288   : > { %s1054_s17 = smov %s904_s10  ;;  %s1055_s18 = smov %s760_s19 }
 0x289   : > { %s1056_s19 = smov %s1058_s5  ;;  %20 = sbr.rel (!%p18_p5) target bundleno = 7 (0x7), region = 93 }
 0x290   :  { %415 = vsyncpa [#allocation4], 1 }
 0x291   :  { %417 = vsyncpa [#allocation4 + $0x1], 1 }
 0x292   :  { %418 = vsyncpa [#allocation7], 1 }
 0x293   :  { %419 = vsyncpa [#allocation5], 1 }
 0x294   :  { %421 = vsyncpa [#allocation5 + $0x1], 1 }

</bundles_post_ra>
